<compile_context>
chip_gen: v6e
topology: v6e:2x2x1
jax: 0.10.0
libtpu: 0.0.40
codegen_flags: <defaults>
</compile_context>

<pallas_src>
import functools

import jax
import jax.numpy as jnp
from jax.experimental import pallas as pl
from jax.experimental.pallas import tpu as pltpu


def _bottleneck_kernel(w_ref, b_ref, x_ref, o_ref, *, H, W, C, BLK, act, activation):
    # w_ref : SMEM (9,)            3x3 filter, row-major [dy*3 + dx]
    # b_ref : SMEM (1,)            conv bias
    # x_ref : VMEM (BLK*C, H*W)    BLK batch elements, images flattened on lanes
    # o_ref : VMEM (BLK*C, H*W)
    HW = H * W
    xf = x_ref[...]                                   # (BLK*C, HW) f32

    # Boundary masks at (1, HW): row-independent, broadcast by jnp.where.
    idx = jax.lax.broadcasted_iota(jnp.int32, (1, HW), 1)
    if (W & (W - 1)) == 0:
        col = jnp.bitwise_and(idx, W - 1)             # cheap mod for power-of-2 W
    else:
        col = jax.lax.rem(idx, W)
    m_left = col != 0                  # source column w-1 exists
    m_right = col != (W - 1)           # source column w+1 exists
    m_top = idx >= W                   # source row h-1 exists
    m_bot = idx < (H - 1) * W          # source row h+1 exists

    # Column-shifted neighbours via XLU lane rolls; the circular wrap-around
    # (which would pull in the adjacent row's edge pixel) is masked to zero,
    # reproducing the conv's zero padding.
    sL = jnp.where(m_left, pltpu.roll(xf, 1, axis=1), 0.0)         # x[:, h, w-1]
    sR = jnp.where(m_right, pltpu.roll(xf, HW - 1, axis=1), 0.0)   # x[:, h, w+1]

    w0, w1, w2, w3, w4, w5, w6, w7, w8 = [w_ref[i] for i in range(9)]

    # Middle source row.
    acc = w4 * xf + (w3 * sL + w5 * sR)
    # Top source row (reaches output row h from source row h-1).
    top = w1 * xf + (w0 * sL + w2 * sR)
    acc = acc + jnp.where(m_top, pltpu.roll(top, W, axis=1), 0.0)
    # Bottom source row (reaches output row h from source row h+1).
    bot = w7 * xf + (w6 * sL + w8 * sR)
    acc = acc + jnp.where(m_bot, pltpu.roll(bot, HW - W, axis=1), 0.0)

    # Skip connection: per-batch channel max (+ bias folded in at (1, HW)),
    # broadcast-added to that batch's C rows, then activation, then store.
    bias = b_ref[0]
    for b in range(BLK):
        grp = x_ref[pl.ds(b * C, C), :]                        # (C, HW)
        gmax = jnp.max(grp, axis=0, keepdims=True) + bias      # (1, HW)
        yb = acc[b * C:(b + 1) * C] + gmax                     # broadcast over C
        if act:
            if activation == "relu":
                yb = jnp.maximum(yb, 0.0)
            elif activation == "lrelu":
                yb = jnp.where(yb >= 0.0, yb, 0.01 * yb)
            elif activation == "tanh":
                yb = jnp.tanh(yb)
        o_ref[pl.ds(b * C, C), :] = yb.astype(o_ref.dtype)


def _choose_blk(B, C, HW, target_bytes=2 << 20):
    """Batch elements per grid step: fill sublanes (BLK*C % 8 == 0), keep the
    block under ~2 MiB, and (when B allows) leave >=16 grid steps for the two
    v7x TensorCores."""
    bytes_per_img = C * HW * 4
    divisors = [d for d in range(1, B + 1) if B % d == 0]
    fitting = [d for d in divisors if d * bytes_per_img <= target_bytes] or [1]
    packed = [d for d in fitting if (d * C) % 8 == 0] or fitting
    multi_step = [d for d in packed if B // d >= 16]
    return max(multi_step) if multi_step else max(packed)


def bottleneck_block_pallas(x, weight, bias, act=True, activation="relu"):
    """x: (B, C, H, W) f32; weight: (1, 1, 3, 3); bias: (1,)."""
    B, C, H, W = x.shape
    HW = H * W
    # Free row-major reshape: lane-dense last dim, batch*channel on sublanes.
    xf = x.astype(jnp.float32).reshape(B * C, HW)
    w_flat = weight.reshape(9).astype(jnp.float32)
    b_flat = bias.reshape(1).astype(jnp.float32)

    BLK = _choose_blk(B, C, HW)
    rows = BLK * C
    grid = (B // BLK,)

    # TODO(synk): for large images add an H-tile grid axis (halo rows fetched
    # per tile, per-tile m_top/m_bot re-derived, H_tile*W a multiple of 128) so
    # double-buffered blocks stay inside v7x's 64 MiB VMEM; channel axis must
    # stay whole (needed for the channel max).
    block_bytes = rows * HW * 4
    vmem_limit = min(48 * 1024 * 1024, max(16 * 1024 * 1024, 8 * block_bytes))

    kernel = functools.partial(
        _bottleneck_kernel, H=H, W=W, C=C, BLK=BLK, act=act, activation=activation)

    out = pl.pallas_call(
        kernel,
        out_shape=jax.ShapeDtypeStruct((B * C, HW), jnp.float32),
        grid=grid,
        in_specs=[
            pl.BlockSpec(memory_space=pltpu.MemorySpace.SMEM),   # weight (9,)
            pl.BlockSpec(memory_space=pltpu.MemorySpace.SMEM),   # bias (1,)
            pl.BlockSpec((rows, HW), lambda i: (i, 0)),
        ],
        out_specs=pl.BlockSpec((rows, HW), lambda i: (i, 0)),
        compiler_params=pltpu.CompilerParams(
            dimension_semantics=("parallel",),
            vmem_limit_bytes=vmem_limit),
    )(w_flat, b_flat, xf)
    return out.reshape(B, C, H, W)


def _reference_forward(x, weight, bias, act=True):
    """Pure-JAX reference matching the PyTorch module semantics."""
    B, C, H, W = x.shape
    sum_layer = jnp.max(x, axis=1, keepdims=True)
    xr = x.reshape(B * C, 1, H, W)
    y = jax.lax.conv_general_dilated(
        xr, weight, window_strides=(1, 1), padding=((1, 1), (1, 1)),
        dimension_numbers=("NCHW", "OIHW", "NCHW"))
    y = y + bias.reshape(1, 1, 1, 1)
    y = y.reshape(B, C, H, W)
    y = y + sum_layer
    if act:
        y = jnp.maximum(y, 0.0)
    return y


if __name__ == "__main__":
    key = jax.random.PRNGKey(0)
    kx, kw, kb = jax.random.split(key, 3)

    B, C, H, W = 2, 4, 16, 16
    x = jax.random.normal(kx, (B, C, H, W), dtype=jnp.float32)

    # nn.Conv2d(1, 1, 3) default init: U(-1/3, 1/3) for weight and bias.
    bound = 1.0 / 3.0
    weight = jax.random.uniform(kw, (1, 1, 3, 3), jnp.float32, -bound, bound)
    bias = jax.random.uniform(kb, (1,), jnp.float32, -bound, bound)

    out = bottleneck_block_pallas(x, weight, bias, act=True)
    out = jax.block_until_ready(out)

    ref = _reference_forward(x, weight, bias, act=True)
    assert out.shape == (B, C, H, W)
    assert jnp.allclose(out, ref, atol=1e-5, rtol=1e-5), "mismatch vs reference"

    print("KERNEL_OK")
</pallas_src>

<mosaic_0001>
module attributes {stable_mosaic.version = 11 : i64} {
  func.func @_bottleneck_kernel(%arg0: i32, %arg1: memref<9xf32, #tpu.memory_space<smem>>, %arg2: memref<1xf32, #tpu.memory_space<smem>>, %arg3: memref<8x256xf32, #tpu.memory_space<vmem>>, %arg4: memref<8x256xf32, #tpu.memory_space<vmem>>) attributes {dimension_semantics = [#tpu.dimension_semantics<parallel>], iteration_bounds = array<i64: 1>, scalar_prefetch = 0 : i64, scratch_operands = 0 : i64, tpu.core_type = #tpu.core_type<tc>, window_params = [{transform_indices = @transform_0, window_bounds = array<i64: 9>}, {transform_indices = @transform_1, window_bounds = array<i64: 1>}, {transform_indices = @transform_2, window_bounds = array<i64: 8, 256>}, {transform_indices = @transform_3, window_bounds = array<i64: 8, 256>}]} {
    %c0 = arith.constant 0 : index
    %c0_0 = arith.constant 0 : index
    %0 = vector.load %arg3[%c0, %c0_0] : memref<8x256xf32, #tpu.memory_space<vmem>>, vector<8x256xf32>
    %1 = tpu.iota {dimensions = array<i32: 1>} : vector<1x256xi32>
    %c15_i32 = arith.constant 15 : i32
    %2 = vector.broadcast %c15_i32 : i32 to vector<1x256xi32>
    %3 = arith.andi %1, %2 : vector<1x256xi32>
    %c0_i32 = arith.constant 0 : i32
    %4 = vector.broadcast %c0_i32 : i32 to vector<1x256xi32>
    %5 = arith.cmpi ne, %3, %4 : vector<1x256xi32>
    %c15_i32_1 = arith.constant 15 : i32
    %6 = vector.broadcast %c15_i32_1 : i32 to vector<1x256xi32>
    %7 = arith.cmpi ne, %3, %6 : vector<1x256xi32>
    %c16_i32 = arith.constant 16 : i32
    %8 = vector.broadcast %c16_i32 : i32 to vector<1x256xi32>
    %9 = arith.cmpi sge, %1, %8 : vector<1x256xi32>
    %c240_i32 = arith.constant 240 : i32
    %10 = vector.broadcast %c240_i32 : i32 to vector<1x256xi32>
    %11 = arith.cmpi slt, %1, %10 : vector<1x256xi32>
    %c1_i32 = arith.constant 1 : i32
    %12 = tpu.dynamic_rotate %0 by %c1_i32 dim 1 : vector<8x256xf32>, i32 -> vector<8x256xf32>
    %cst = arith.constant 0.000000e+00 : f32
    %13 = vector.shape_cast %5 : vector<1x256xi1> to vector<1x256xi1>
    %14 = vector.broadcast %13 : vector<1x256xi1> to vector<8x256xi1>
    %15 = vector.broadcast %cst : f32 to vector<8x256xf32>
    %16 = arith.select %14, %12, %15 : vector<8x256xi1>, vector<8x256xf32>
    %c255_i32 = arith.constant 255 : i32
    %17 = tpu.dynamic_rotate %0 by %c255_i32 dim 1 : vector<8x256xf32>, i32 -> vector<8x256xf32>
    %cst_2 = arith.constant 0.000000e+00 : f32
    %18 = vector.shape_cast %7 : vector<1x256xi1> to vector<1x256xi1>
    %19 = vector.broadcast %18 : vector<1x256xi1> to vector<8x256xi1>
    %20 = vector.broadcast %cst_2 : f32 to vector<8x256xf32>
    %21 = arith.select %19, %17, %20 : vector<8x256xi1>, vector<8x256xf32>
    %c0_3 = arith.constant 0 : index
    %22 = memref.load %arg1[%c0_3] : memref<9xf32, #tpu.memory_space<smem>>
    %c1 = arith.constant 1 : index
    %23 = memref.load %arg1[%c1] : memref<9xf32, #tpu.memory_space<smem>>
    %c2 = arith.constant 2 : index
    %24 = memref.load %arg1[%c2] : memref<9xf32, #tpu.memory_space<smem>>
    %c3 = arith.constant 3 : index
    %25 = memref.load %arg1[%c3] : memref<9xf32, #tpu.memory_space<smem>>
    %c4 = arith.constant 4 : index
    %26 = memref.load %arg1[%c4] : memref<9xf32, #tpu.memory_space<smem>>
    %c5 = arith.constant 5 : index
    %27 = memref.load %arg1[%c5] : memref<9xf32, #tpu.memory_space<smem>>
    %c6 = arith.constant 6 : index
    %28 = memref.load %arg1[%c6] : memref<9xf32, #tpu.memory_space<smem>>
    %c7 = arith.constant 7 : index
    %29 = memref.load %arg1[%c7] : memref<9xf32, #tpu.memory_space<smem>>
    %c8 = arith.constant 8 : index
    %30 = memref.load %arg1[%c8] : memref<9xf32, #tpu.memory_space<smem>>
    %31 = vector.broadcast %26 : f32 to vector<8x256xf32>
    %32 = arith.mulf %31, %0 : vector<8x256xf32>
    %33 = vector.broadcast %25 : f32 to vector<8x256xf32>
    %34 = arith.mulf %33, %16 : vector<8x256xf32>
    %35 = vector.broadcast %27 : f32 to vector<8x256xf32>
    %36 = arith.mulf %35, %21 : vector<8x256xf32>
    %37 = arith.addf %34, %36 : vector<8x256xf32>
    %38 = arith.addf %32, %37 : vector<8x256xf32>
    %39 = vector.broadcast %23 : f32 to vector<8x256xf32>
    %40 = arith.mulf %39, %0 : vector<8x256xf32>
    %41 = vector.broadcast %22 : f32 to vector<8x256xf32>
    %42 = arith.mulf %41, %16 : vector<8x256xf32>
    %43 = vector.broadcast %24 : f32 to vector<8x256xf32>
    %44 = arith.mulf %43, %21 : vector<8x256xf32>
    %45 = arith.addf %42, %44 : vector<8x256xf32>
    %46 = arith.addf %40, %45 : vector<8x256xf32>
    %c16_i32_4 = arith.constant 16 : i32
    %47 = tpu.dynamic_rotate %46 by %c16_i32_4 dim 1 : vector<8x256xf32>, i32 -> vector<8x256xf32>
    %cst_5 = arith.constant 0.000000e+00 : f32
    %48 = vector.shape_cast %9 : vector<1x256xi1> to vector<1x256xi1>
    %49 = vector.broadcast %48 : vector<1x256xi1> to vector<8x256xi1>
    %50 = vector.broadcast %cst_5 : f32 to vector<8x256xf32>
    %51 = arith.select %49, %47, %50 : vector<8x256xi1>, vector<8x256xf32>
    %52 = arith.addf %38, %51 : vector<8x256xf32>
    %53 = vector.broadcast %29 : f32 to vector<8x256xf32>
    %54 = arith.mulf %53, %0 : vector<8x256xf32>
    %55 = vector.broadcast %28 : f32 to vector<8x256xf32>
    %56 = arith.mulf %55, %16 : vector<8x256xf32>
    %57 = vector.broadcast %30 : f32 to vector<8x256xf32>
    %58 = arith.mulf %57, %21 : vector<8x256xf32>
    %59 = arith.addf %56, %58 : vector<8x256xf32>
    %60 = arith.addf %54, %59 : vector<8x256xf32>
    %c240_i32_6 = arith.constant 240 : i32
    %61 = tpu.dynamic_rotate %60 by %c240_i32_6 dim 1 : vector<8x256xf32>, i32 -> vector<8x256xf32>
    %cst_7 = arith.constant 0.000000e+00 : f32
    %62 = vector.shape_cast %11 : vector<1x256xi1> to vector<1x256xi1>
    %63 = vector.broadcast %62 : vector<1x256xi1> to vector<8x256xi1>
    %64 = vector.broadcast %cst_7 : f32 to vector<8x256xf32>
    %65 = arith.select %63, %61, %64 : vector<8x256xi1>, vector<8x256xf32>
    %66 = arith.addf %52, %65 : vector<8x256xf32>
    %c0_8 = arith.constant 0 : index
    %67 = memref.load %arg2[%c0_8] : memref<1xf32, #tpu.memory_space<smem>>
    %c0_9 = arith.constant 0 : index
    %c0_10 = arith.constant 0 : index
    %68 = vector.load %arg3[%c0_9, %c0_10] : memref<8x256xf32, #tpu.memory_space<vmem>>, vector<4x256xf32>
    %cst_11 = arith.constant dense<0xFF800000> : vector<256xf32>
    %69 = vector.multi_reduction <maximumf>, %68, %cst_11 [0] : vector<4x256xf32> to vector<256xf32>
    %70 = vector.shape_cast %69 : vector<256xf32> to vector<1x256xf32>
    %71 = vector.broadcast %67 : f32 to vector<1x256xf32>
    %72 = arith.addf %70, %71 : vector<1x256xf32>
    %73 = vector.extract_strided_slice %66 {offsets = [0, 0], sizes = [4, 256], strides = [1, 1]} : vector<8x256xf32> to vector<4x256xf32>
    %74 = vector.broadcast %72 : vector<1x256xf32> to vector<4x256xf32>
    %75 = arith.addf %73, %74 : vector<4x256xf32>
    %cst_12 = arith.constant 0.000000e+00 : f32
    %76 = vector.broadcast %cst_12 : f32 to vector<4x256xf32>
    %77 = arith.maximumf %75, %76 : vector<4x256xf32>
    %c0_13 = arith.constant 0 : index
    %c0_14 = arith.constant 0 : index
    %78 = vector.load %arg4[%c0_13, %c0_14] : memref<8x256xf32, #tpu.memory_space<vmem>>, vector<4x256xf32>
    tpu.vector_store %arg4[%c0_13, %c0_14], %77 {strides = array<i32>} : memref<8x256xf32, #tpu.memory_space<vmem>>, vector<4x256xf32>,
    %c4_15 = arith.constant 4 : index
    %c0_16 = arith.constant 0 : index
    %79 = vector.load %arg3[%c4_15, %c0_16] : memref<8x256xf32, #tpu.memory_space<vmem>>, vector<4x256xf32>
    %cst_17 = arith.constant dense<0xFF800000> : vector<256xf32>
    %80 = vector.multi_reduction <maximumf>, %79, %cst_17 [0] : vector<4x256xf32> to vector<256xf32>
    %81 = vector.shape_cast %80 : vector<256xf32> to vector<1x256xf32>
    %82 = vector.broadcast %67 : f32 to vector<1x256xf32>
    %83 = arith.addf %81, %82 : vector<1x256xf32>
    %84 = vector.extract_strided_slice %66 {offsets = [4, 0], sizes = [4, 256], strides = [1, 1]} : vector<8x256xf32> to vector<4x256xf32>
    %85 = vector.broadcast %83 : vector<1x256xf32> to vector<4x256xf32>
    %86 = arith.addf %84, %85 : vector<4x256xf32>
    %cst_18 = arith.constant 0.000000e+00 : f32
    %87 = vector.broadcast %cst_18 : f32 to vector<4x256xf32>
    %88 = arith.maximumf %86, %87 : vector<4x256xf32>
    %c4_19 = arith.constant 4 : index
    %c0_20 = arith.constant 0 : index
    %89 = vector.load %arg4[%c4_19, %c0_20] : memref<8x256xf32, #tpu.memory_space<vmem>>, vector<4x256xf32>
    tpu.vector_store %arg4[%c4_19, %c0_20], %88 {strides = array<i32>} : memref<8x256xf32, #tpu.memory_space<vmem>>, vector<4x256xf32>,
    return
  }
  func.func @transform_0(%arg0: i32) -> i32 {
    %c0_i32 = arith.constant 0 : i32
    %c0_i32_0 = arith.constant 0 : i32
    return %c0_i32 : i32
  }
  func.func @transform_1(%arg0: i32) -> i32 {
    %c0_i32 = arith.constant 0 : i32
    %c0_i32_0 = arith.constant 0 : i32
    return %c0_i32 : i32
  }
  func.func @transform_2(%arg0: i32) -> (i32, i32) {
    %c0_i32 = arith.constant 0 : i32
    %c0_i32_0 = arith.constant 0 : i32
    return %arg0, %c0_i32 : i32, i32
  }
  func.func @transform_3(%arg0: i32) -> (i32, i32) {
    %c0_i32 = arith.constant 0 : i32
    %c0_i32_0 = arith.constant 0 : i32
    return %arg0, %c0_i32 : i32, i32
  }
}

</mosaic_0001>

<bundles_post_ra>
// kernel: tpu_custom_call.1
= control target key start
LH: loop header
LB: loop body
LE: loop exit
PB: predicated region body
PF: predicated region fallthrough
CT: control target
= control target key end

     0   :  { %9 = vsyncpa [#allocation6], 0  ;;  %s423_s0 = inlined_call_operand.vmem [shape: f32[9], index: 0, kind: input, shape index: {}]   ;;  %s424_s1 = inlined_call_operand.<no memory space> [shape: f32[1], index: 1, kind: input, shape index: {}]   ;;  %s425_s2 = inlined_call_operand.hbm [shape: f32[8,256], index: 2, kind: input, shape index: {}]   ;;  %s426_s3 = inlined_call_operand.hbm [shape: f32[8,256], index: 3, kind: output, shape index: {}]  }
   0x1   :  { %10 = vsyncpa [#allocation4], 0 }
   0x2   :  { %11 = vsyncpa [#allocation5], 0  ;;  %s18_s14 = sshll.u32 %s423_s0, 4  ;;  %s19_s14 = int_to_ptr.vmem [resolvable:$true] %s18_s14 }
   0x3   :  { %s243_s15 = scalar_lea.vmem %s19_s14, 16  ;;  %p248_p1 = scmp.lt.s32.totalorder %s19_s14, %s19_s14 }
   0x4   :  { %p244_p0 = scmp.ne.s32.totalorder %s19_s14, %s243_s15  ;;  %p249_p2 = scmp.lt.s32.totalorder %s243_s15, %s243_s15 }
   0x6   :  { %p250_p3 = por %p249_p2, %p248_p1 }
   0x8   :  { %p251_p4 = pnand %p250_p3, %p244_p0 }
   0xa   :  { %254 = shalt.err (!%p251_p4)
}
   0xb   :  { %s301_s16 = smov [#allocation3]   ;;  %s302_s17 = smov [#allocation7]  }
   0xc   :  { %21 = dma.vmem_to_smem %s19_s14, 16, %s301_s16, [#allocation6]  }
   0xd   :  { %s30_s18 = sshll.u32 %s302_s17, 4  ;;  %s31_s18 = int_to_ptr.vmem [resolvable:$true] %s30_s18 }
   0xe   :  { %s263_s19 = scalar_lea.vmem %s31_s18, 256  ;;  %p268_p6 = scmp.lt.s32.totalorder %s31_s18, %s31_s18 }
   0xf   :  { %p264_p5 = scmp.ne.s32.totalorder %s31_s18, %s263_s19  ;;  %p269_p7 = scmp.lt.s32.totalorder %s263_s19, %s263_s19 }
  0x11   :  { %p270_p8 = por %p269_p7, %p268_p6 }
  0x13   :  { %p271_p9 = pnand %p270_p8, %p264_p5 }
  0x15   :  { %274 = shalt.err (!%p271_p9)
}
  0x16   :  { %33 = dma.hbm_to_vmem [thread:$0]  %s425_s2, 256, %s31_s18, [#allocation4]  }
  0x17   :  { %295 = dma.done.wait [#allocation6], 16  }
  0x18   :  { %296 = vsyncadd [#allocation6], 4294967280 }
  0x19   :  { %297 = dma.done.wait [#allocation4], 256  }
  0x1a   :  { %298 = vsyncadd [#allocation4], 4294967040 }
  0x1b   :  { %40 = sfence }
  0x1c   :  { %v334_v0 = vld [vmem:[#allocation7] sm:$0xff]  ;;  %s303_s21 = smov 127   ;;  %s304_s22 = smov 1   ;;  %v338_v1 = vld [vmem:[#allocation7 + $0x8] sm:$0xff]  ;;  %v43_v2 = vlaneseq  ;;  %vm163_vm6 = vcmask 1043456   ;;  %vm189_vm7 = vcmask 1047556  }
  0x1d   :  { %69 = vrot.lane.b32.xlu1 %v334_v0, %s303_s21  ;;  %56 = vrot.lane.b32.xlu0 %v334_v0, %s304_s22  ;;  %s342_s2 = sld [smem:[#allocation3 + $0x2]]  ;;  %s305_s4 = smov 16   ;;  %v161_v62 = vld [vmem:[#allocation7] sm:$0xf]  ;;  %v162_v63 = vld [vmem:[#allocation7 + $0x8] sm:$0xf] }
  0x1e   :  { %s344_s23 = sld [smem:[#allocation3 + $0x5]]  ;;  %v346_v3 = vand.u32 127, %v43_v2  ;;  %s306_s5 = smov 112   ;;  %v164_v2 = vsel %vm163_vm6, %v161_v62, -inf }
  0x1f   :  { %s348_s24 = sld [smem:[#allocation3 + $0x8]] }
  0x20   :  { %s350_s25 = sld [smem:[#allocation3]]  ;;  %v353_v4 = vadd.s32 128, %v346_v3  ;;  %v46_v5 = vand.u32 15, %v346_v3  ;;  %vm73_vm0 = vcmp.lt.s32.totalorder %v346_v3, 127  ;;  %vm60_vm1 = vcmp.lt.s32.totalorder %v346_v3, 1 }
  0x21   :  { %71 = vrot.lane.b32.xlu1 %v338_v1, %s303_s21  ;;  %58 = vrot.lane.b32.xlu0 %v338_v1, %s304_s22  ;;  %s228_s26 = sld [smem:[#allocation3 + $0x1]]  ;;  %vm121_vm8 = vcmp.lt.s32.totalorder %v346_v3, 16  ;;  %vm52_vm9 = vcmp.ge.s32.totalorder %v346_v3, 16  ;;  %vm149_vm10 = vcmp.lt.s32.totalorder %v346_v3, 112 }
  0x22   :  { %s231_s27 = sld [smem:[#allocation3 + $0x4]]  ;;  %v47_v6 = vand.u32 15, %v353_v4  ;;  %vm365_vm2 = vcmp.ne.s32.totalorder %v46_v5, 15  ;;  %vm370_vm3 = vcmp.ne.s32.totalorder %v46_v5, 0  ;;  %v171_v5 = vsel %vm163_vm6, %v162_v63, -inf }
  0x23   :  { %s355_s28 = sld [smem:[#allocation3 + $0x3]]  ;;  %v110_v11 = vstv %s342_s2  ;;  %vm55_vm11 = vcmp.lt.s32.totalorder %v353_v4, 240 }
  0x24   :  { %s357_s29 = sld [smem:[#allocation3 + $0x6]]  ;;  %vm374_vm4 = vcmp.ne.s32.totalorder %v47_v6, 15  ;;  %v97_v15 = vstv %s344_s23  ;;  %vm380_vm5 = vcmp.ne.s32.totalorder %v47_v6, 0 }
  0x25   :  { %s359_s30 = sld [smem:[#allocation3 + $0x7]]  ;;  %v138_v16 = vstv %s348_s24 }
  0x26   :  { %v107_v19 = vstv %s350_s25 }
  0x27   :  { %v104_v9 = vstv %s228_s26 }
  0x28   :  { %v91_v13 = vstv %s231_s27  ;;  %v106_v21 = vmul.f32 %v104_v9, %v338_v1  ;;  %v105_v24 = vmul.f32 %v104_v9, %v334_v0  ;;  %v172_v9 = vrot.slane %v171_v5, 4 }
  0x29   :  { %v94_v18 = vstv %s355_s28  ;;  %v93_v26 = vmul.f32 %v91_v13, %v338_v1  ;;  %v92_v27 = vmul.f32 %v91_v13, %v334_v0 }
  0x2a   :  { %v135_v20 = vstv %s357_s29  ;;  %v173_v13 = vmax.f32 %v171_v5, %v172_v9 }
  0x2b   :  { %v132_v25 = vstv %s359_s30 }
  0x2c   :  { %v134_v52 = vmul.f32 %v132_v25, %v338_v1  ;;  %v133_v53 = vmul.f32 %v132_v25, %v334_v0  ;;  %v187_v1 = vld [vmem:[#allocation7] sm:$0xf0]  ;;  %v188_v0 = vld [vmem:[#allocation7 + $0x8] sm:$0xf0]  ;;  %v174_v17 = vrot.slane %v173_v13, 2 }
  0x2d   :  { %v190_v6 = vsel %vm189_vm7, %v187_v1, -inf }
  0x2e   :  { %v191_v10 = vrot.slane %v190_v6, 4 }
  0x30   :  { %v192_v14 = vmax.f32 %v190_v6, %v191_v10 }
  0x8f   :  { %v70_v7 = vpop.permute.xlu1 %69  ;;  %v57_v8 = vpop.permute.xlu0 %56 }
  0x93   :  { %v72_v22 = vpop.permute.xlu1 %71  ;;  %v59_v23 = vpop.permute.xlu0 %58 }
  0x94   :  { %v74_v28 = vsel %vm73_vm0, %v70_v7, %v72_v22  ;;  %v75_v29 = vsel %vm73_vm0, %v72_v22, %v70_v7  ;;  %v61_v30 = vsel %vm60_vm1, %v57_v8, %v59_v23  ;;  %v62_v31 = vsel %vm60_vm1, %v59_v23, %v57_v8 }
  0x95   :  { %v80_v32 = vsel %vm365_vm2, %v74_v28, 0.0  ;;  %v81_v33 = vsel %vm374_vm4, %v75_v29, 0.0  ;;  %v67_v34 = vsel %vm370_vm3, %v62_v31, 0.0  ;;  %v68_v35 = vsel %vm380_vm5, %v61_v30, 0.0 }
  0x96   :  { %v98_v36 = vmul.f32 %v97_v15, %v80_v32  ;;  %v99_v37 = vmul.f32 %v97_v15, %v81_v33  ;;  %v111_v38 = vmul.f32 %v110_v11, %v80_v32  ;;  %v112_v39 = vmul.f32 %v110_v11, %v81_v33 }
  0x97   :  { %v139_v40 = vmul.f32 %v138_v16, %v80_v32  ;;  %v140_v41 = vmul.f32 %v138_v16, %v81_v33  ;;  %v95_v42 = vmul.f32 %v94_v18, %v67_v34  ;;  %v96_v43 = vmul.f32 %v94_v18, %v68_v35 }
  0x98   :  { %v108_v44 = vmul.f32 %v107_v19, %v67_v34  ;;  %v109_v45 = vmul.f32 %v107_v19, %v68_v35  ;;  %v136_v46 = vmul.f32 %v135_v20, %v67_v34  ;;  %v137_v47 = vmul.f32 %v135_v20, %v68_v35 }
  0x99   :  { %v100_v48 = vadd.f32 %v98_v36, %v95_v42  ;;  %v101_v49 = vadd.f32 %v99_v37, %v96_v43  ;;  %v197_v7 = vsel %vm189_vm7, %v188_v0, -inf  ;;  %v165_v8 = vrot.slane %v164_v2, 4 }
  0x9a   :  { %v114_v50 = vadd.f32 %v112_v39, %v109_v45  ;;  %v113_v51 = vadd.f32 %v111_v38, %v108_v44  ;;  %v142_v58 = vadd.f32 %v140_v41, %v137_v47  ;;  %v141_v59 = vadd.f32 %v139_v40, %v136_v46 }
  0x9b   :  { %v410_v54 = vadd.f32 %v101_v49, %v93_v26  ;;  %v102_v55 = vadd.f32 %v100_v48, %v92_v27  ;;  %v198_v11 = vrot.slane %v197_v7, 4  ;;  %v166_v12 = vmax.f32 %v164_v2, %v165_v8 }
  0x9c   :  { %v116_v56 = vadd.f32 %v114_v50, %v106_v21  ;;  %v115_v57 = vadd.f32 %v113_v51, %v105_v24  ;;  %v144_v60 = vadd.f32 %v142_v58, %v134_v52  ;;  %v143_v61 = vadd.f32 %v141_v59, %v133_v53 }
  0x9d   :  { %v199_v15 = vmax.f32 %v197_v7, %v198_v11  ;;  %v167_v16 = vrot.slane %v166_v12, 2  ;;  %v193_v18 = vrot.slane %v192_v14, 2  ;;  %v175_v21 = vmax.f32 %v173_v13, %v174_v17 }
  0x9e   :  { %119 = vrot.lane.b32.xlu1 %v116_v56, %s305_s4  ;;  %117 = vrot.lane.b32.xlu0 %v115_v57, %s305_s4  ;;  %v178_v34 = vstv %s424_s1  ;;  %s307_s1 = smov [#allocation8]  }
  0x9f   :  { %v200_v19 = vrot.slane %v199_v15, 2  ;;  %v168_v20 = vmax.f32 %v166_v12, %v167_v16  ;;  %v194_v22 = vmax.f32 %v192_v14, %v193_v18  ;;  %v176_v25 = vrot.slane %v175_v21, 1  ;;  %s218_s8 = sshll.u32 %s307_s1, 4  ;;  %s219_s8 = int_to_ptr.vmem [resolvable:$true] %s218_s8 }
  0xa0   :  { %s275_s9 = scalar_lea.vmem %s219_s8, 256  ;;  %p280_p11 = scmp.lt.s32.totalorder %s219_s8, %s219_s8 }
  0xa1   :  { %v201_v23 = vmax.f32 %v199_v15, %v200_v19  ;;  %v169_v24 = vrot.slane %v168_v20, 1  ;;  %v195_v26 = vrot.slane %v194_v22, 1  ;;  %v177_v31 = vmax.f32 %v175_v21, %v176_v25  ;;  %p276_p10 = scmp.ne.s32.totalorder %s219_s8, %s275_s9  ;;  %p281_p12 = scmp.lt.s32.totalorder %s275_s9, %s275_s9 }
  0xa2   :  { %147 = vrot.lane.b32.xlu1 %v144_v60, %s306_s5  ;;  %145 = vrot.lane.b32.xlu0 %v143_v61, %s306_s5 }
  0xa3   :  { %v202_v27 = vrot.slane %v201_v23, 1  ;;  %v170_v30 = vmax.f32 %v168_v20, %v169_v24  ;;  %v196_v32 = vmax.f32 %v194_v22, %v195_v26  ;;  %v180_v41 = vadd.f32 %v178_v34, %v177_v31  ;;  %p282_p13 = por %p281_p12, %p280_p11 }
  0xa5   :  { %v203_v35 = vmax.f32 %v201_v23, %v202_v27  ;;  %v179_v40 = vadd.f32 %v178_v34, %v170_v30  ;;  %v204_v42 = vadd.f32 %v196_v32, %v178_v34  ;;  %p283_p0 = pnand %p282_p13, %p276_p10 }
  0xa7   :  { %v205_v45 = vadd.f32 %v203_v35, %v178_v34 }
 0x110   :  { %v120_v28 = vpop.permute.xlu1 %119  ;;  %v118_v29 = vpop.permute.xlu0 %117 }
 0x111   :  { %v123_v33 = vsel %vm121_vm8, %v120_v28, %v118_v29  ;;  %v122_v36 = vsel %vm121_vm8, %v118_v29, %v120_v28 }
 0x112   :  { %v128_v37 = vsel %vm52_vm9, %v123_v33, 0.0  ;;  %v131_v44 = vadd.f32 %v122_v36, %v410_v54 }
 0x113   :  { %v130_v38 = vadd.f32 %v128_v37, %v102_v55 }
 0x114   :  { %v148_v39 = vpop.permute.xlu1 %147  ;;  %v146_v43 = vpop.permute.xlu0 %145 }
 0x115   :  { %v150_v46 = vsel %vm149_vm10, %v146_v43, %v148_v39  ;;  %v151_v47 = vsel %vm149_vm10, %v148_v39, %v146_v43 }
 0x116   :  { %v157_v48 = vsel %vm55_vm11, %v151_v47, 0.0  ;;  %v158_v49 = vadd.f32 %v150_v46, %v130_v38 }
 0x117   :  { %v159_v50 = vadd.f32 %v157_v48, %v131_v44 }
 0x118   :  { %v181_v51 = vadd.f32 %v179_v40, %v158_v49  ;;  %v206_v52 = vadd.f32 %v204_v42, %v158_v49 }
 0x119   :  { %v182_v3 = vadd.f32 %v180_v41, %v159_v50  ;;  %v207_v53 = vadd.f32 %v205_v45, %v159_v50 }
 0x11a   :  { %v183_v4 = vmax.f32 %v181_v51, 0.0  ;;  %v208_v55 = vmax.f32 %v206_v52, 0.0 }
 0x11b   :  { %v184_v56 = vmax.f32 %v182_v3, 0.0  ;;  %v209_v57 = vmax.f32 %v207_v53, 0.0 }
 0x11c   :  { %185 = vst [vmem:[#allocation8] sm:$0xf] %v183_v4  ;;  %210 = vst [vmem:[#allocation8] sm:$0xf0] %v208_v55 }
 0x11d   :  { %186 = vst [vmem:[#allocation8 + $0x8] sm:$0xf] %v184_v56  ;;  %211 = vst [vmem:[#allocation8 + $0x8] sm:$0xf0] %v209_v57 }
 0x11e   :  { %286 = shalt.err (!%p283_p0)
}
 0x11f   :  { %221 = dma.vmem_to_hbm [thread:$0]  %s219_s8, 256, %s426_s3, [#allocation5]  }
 0x120   :  { %299 = dma.done.wait [#allocation5], 256  }
 0x121   :  { %300 = vsyncadd [#allocation5], 4294967040 }
 0x122   :  { %225 = vsyncpa [#allocation4], 1 }
 0x123   :  { %226 = vsyncpa [#allocation5], 1 }
 0x124   :  { %227 = vsyncpa [#allocation6], 1 }

</bundles_post_ra>
